<compile_context>
chip_gen: v7x
topology: tpu7x:2x2x1
jax: 0.10.0
libtpu: 0.0.40
codegen_flags: <defaults>
</compile_context>

<pallas_src>
import functools

import jax
import jax.numpy as jnp
from jax import lax
from jax.experimental import pallas as pl
from jax.experimental.pallas import tpu as pltpu


def _cdiv(a, b):
    return -(-a // b)


def _round_up(a, m):
    return _cdiv(a, m) * m


# ----------------------------------------------------------------------------
# Kernel 1: Gram matrix G = X @ X.T on the MXU, K-tiled reduction,
#           optional 2-way core split on the leading grid axis.
# ----------------------------------------------------------------------------
def _gram_kernel(x_ref, g_ref):
    k = pl.program_id(1)

    @pl.when(k == 0)
    def _init():
        g_ref[...] = jnp.zeros_like(g_ref)

    x = x_ref[...]                                           # (B, tk)
    # Contract the last dim of both operands (== X @ X.T) without an explicit transpose.
    g_ref[...] += lax.dot_general(
        x, x, dimension_numbers=(((1,), (1,)), ((), ())),
        preferred_element_type=jnp.float32)


def gram_matrix(x, *, compute_dtype=jnp.float32, buf_budget_bytes=4 << 20):
    """x: (B, K) -> (B, B) Gram matrix, f32-accumulated."""
    B, K = x.shape
    itemsize = jnp.dtype(compute_dtype).itemsize

    # --- tile sizing from a VMEM byte budget (generation-safe) ---
    k128 = _round_up(K, 128)                                 # lane-dense K
    tk_budget = max(128, (buf_budget_bytes // (B * itemsize)) // 128 * 128)
    if k128 <= tk_budget:
        nk, tk = 1, k128                                     # single grid step, no big pad
    else:
        nk = _cdiv(k128, tk_budget)
        if nk % 2:                                           # make the 2-way split exact
            nk += 1
        tk = _round_up(_cdiv(k128, nk), 128)
    k_pad = nk * tk                                          # pad < nk*128 columns (tiny)

    n_split = 2 if nk >= 2 else 1                            # use both v7x TensorCores
    nk_per = nk // n_split

    if k_pad != K:
        x = jnp.pad(x, ((0, 0), (0, k_pad - K)))             # zero pad: G unchanged
    x = x.astype(compute_dtype)

    # double-buffered (B, tk) input + (B, B) f32 accumulator (+ revisit buffer)
    vmem_need = 2 * B * tk * itemsize + 2 * B * B * 4
    vmem_limit = int(min(48 << 20, max(vmem_need + (4 << 20), 16 << 20)))

    cost = pl.CostEstimate(
        flops=2 * B * B * k_pad,
        transcendentals=0,
        bytes_accessed=B * k_pad * itemsize + n_split * B * B * 4)

    g_parts = pl.pallas_call(
        _gram_kernel,
        out_shape=jax.ShapeDtypeStruct((n_split, B, B), jnp.float32),
        grid=(n_split, nk_per),
        in_specs=[pl.BlockSpec((B, tk), lambda s, k: (0, s * nk_per + k))],
        out_specs=pl.BlockSpec((None, B, B), lambda s, k: (s, 0, 0)),  # resident per split
        compiler_params=pltpu.CompilerParams(
            dimension_semantics=("parallel", "arbitrary"),
            vmem_limit_bytes=vmem_limit),
        cost_estimate=cost,
    )(x)
    return jnp.sum(g_parts, axis=0)                          # (B, B)


# ----------------------------------------------------------------------------
# Kernel 2: back-facing projected area per view:
#   area_view[b] = sum_f areas[f] * |dot(n_f, v_b)|  where dot(n_f, v_b) < 0
# Areas are pre-folded into the normals; faces on the lane axis; (B, 128) VMEM
# scratch holds per-lane partials, single cross-lane reduce on the last step.
# ----------------------------------------------------------------------------
def _proj_area_kernel(n_ref, v_ref, o_ref, acc_ref):
    k = pl.program_id(0)

    @pl.when(k == 0)
    def _init():
        acc_ref[...] = jnp.zeros_like(acc_ref)

    n = n_ref[...]                                           # (3, tf) area-scaled normals
    v = v_ref[...]                                           # (B, 3)
    # dots[b, f] = sum_c v[b, c] * (area*n)[c, f] -- 3 broadcast FMAs, no K=3 MXU matmul
    dots = (v[:, 0:1] * n[0:1, :]
            + v[:, 1:2] * n[1:2, :]
            + v[:, 2:3] * n[2:3, :])                         # (B, tf)
    proj = jnp.maximum(-dots, 0.0)                           # area*|dot| for back-facing
    tf = proj.shape[1]
    # Pure-VALU lane-chunk accumulation; the XLU reduce happens once at the end.
    for c in range(tf // 128):
        acc_ref[...] += proj[:, c * 128:(c + 1) * 128]

    @pl.when(k == pl.num_programs(0) - 1)
    def _final():
        o_ref[...] = jnp.sum(acc_ref[...], axis=1, keepdims=True)   # (B, 1)


def projected_areas(face_normals, face_areas, view_vectors, *, tf_cap=8192):
    F = face_normals.shape[0]
    B = view_vectors.shape[0]

    f128 = _round_up(F, 128)
    if f128 <= tf_cap:
        nf, tf = 1, f128                                     # typical meshes: one grid step
    else:
        nf = _cdiv(f128, tf_cap)
        tf = _round_up(_cdiv(f128, nf), 128)
    f_pad = nf * tf

    # Fold areas into normals: areas >= 0, so a*relu(-dot(n,v)) == relu(-dot(a*n, v)).
    n_scaled = (face_normals * face_areas[:, None]).T.astype(jnp.float32)   # (3, F)
    if f_pad != F:
        n_scaled = jnp.pad(n_scaled, ((0, 0), (0, f_pad - F)))  # zero => zero contribution

    out = pl.pallas_call(
        _proj_area_kernel,
        out_shape=jax.ShapeDtypeStruct((B, 1), jnp.float32),
        grid=(nf,),
        in_specs=[
            pl.BlockSpec((3, tf), lambda k: (0, k)),
            pl.BlockSpec((B, 3), lambda k: (0, 0)),          # tiny, grid-invariant
        ],
        out_specs=pl.BlockSpec((B, 1), lambda k: (0, 0)),    # written only on last step
        scratch_shapes=[pltpu.VMEM((B, 128), jnp.float32)],
        compiler_params=pltpu.CompilerParams(
            dimension_semantics=("arbitrary",)),
    )(n_scaled, view_vectors)
    return out[:, 0]                                         # (B,)


# ----------------------------------------------------------------------------
# Forward pass glue (matches ContrastiveLoss.forward semantics)
# ----------------------------------------------------------------------------
@functools.partial(jax.jit, static_argnames=("margin", "beta"))
def contrastive_loss(rcs, plane_ids, theta_deg, phi_deg, freqs,
                     face_normals, face_areas, margin=0.1, beta=0.1):
    B = rcs.shape[0]
    hw = rcs.shape[1] * rcs.shape[2]

    # spherical_to_cartesian on np.radians(angles)
    theta = jnp.deg2rad(theta_deg)
    phi = jnp.deg2rad(phi_deg)
    views = jnp.stack([jnp.sin(phi) * jnp.cos(theta),
                       jnp.sin(phi) * jnp.sin(theta),
                       jnp.cos(phi)], axis=1)                 # (B, 3)

    # --- hot paths (Pallas kernels) ---
    x = rcs.reshape(B, hw)                                    # lane-dense flatten (view)
    G = gram_matrix(x)                                        # (B, B) MXU Gram matrix
    sq = jnp.diagonal(G)                                      # row sum-of-squares
    # mse[i,j] = mean((x_i - x_j)^2); clamp for f32 cancellation on near-identical rows
    mse = jnp.maximum(sq[:, None] + sq[None, :] - 2.0 * G, 0.0) / hw

    area_view = projected_areas(face_normals, face_areas, views)   # (B,)

    # --- per-pair scalar combination (glue) ---
    area_diff = jnp.abs(area_view[:, None] - area_view[None, :])
    angle_sim = jnp.clip(1.0 / (1.0 + 10.0 * area_diff), 0.0, 1.0)
    angle_dif = 1.0 - angle_sim

    freq_dif = jnp.abs(freqs[:, None] - freqs[None, :])
    freq_sim = 1.0 - freq_dif

    angle_loss = mse * angle_sim - jnp.maximum(angle_dif - margin, 0.0) * mse
    freq_loss = mse * freq_sim - jnp.maximum(freq_dif - margin, 0.0) * mse
    pairwise = beta * angle_loss + freq_loss

    ii = jnp.arange(B)[:, None]
    jj = jnp.arange(B)[None, :]
    pair_mask = (ii < jj) & (plane_ids[:, None] == plane_ids[None, :])

    total = jnp.sum(jnp.where(pair_mask, pairwise, 0.0))
    count = jnp.sum(pair_mask.astype(jnp.float32))
    return jnp.where(count > 0, total / jnp.maximum(count, 1.0), 0.0)


if __name__ == "__main__":
    key = jax.random.PRNGKey(0)
    B, H, W = 4, 16, 16
    F_FACES = 512

    k1, k2, k3, k4, k5, k6 = jax.random.split(key, 6)
    rcs = jax.random.normal(k1, (B, H, W), dtype=jnp.float32)
    # plane names mapped to integer ids (string compare has no device equivalent)
    plane_ids = jnp.array([0, 0, 1, 0], dtype=jnp.int32)
    theta_deg = jax.random.uniform(k2, (B,), jnp.float32, 0.0, 360.0)
    phi_deg = jax.random.uniform(k3, (B,), jnp.float32, 0.0, 180.0)
    freqs = jax.random.uniform(k4, (B,), jnp.float32, 0.0, 1.0)

    # deterministic synthetic mesh (stand-in for trimesh .obj load)
    normals = jax.random.normal(k5, (F_FACES, 3), dtype=jnp.float32)
    normals = normals / jnp.linalg.norm(normals, axis=1, keepdims=True)
    areas = jax.random.uniform(k6, (F_FACES,), jnp.float32, 0.01, 1.0)

    loss = contrastive_loss(rcs, plane_ids, theta_deg, phi_deg, freqs,
                            normals, areas, margin=0.1, beta=0.1)
    jax.block_until_ready(loss)
    print("KERNEL_OK")
</pallas_src>

<mosaic_0001>
module attributes {stable_mosaic.version = 11 : i64} {
  func.func @_gram_kernel(%arg0: i32, %arg1: i32, %arg2: memref<4x256xf32, #tpu.memory_space<vmem>>, %arg3: memref<1x4x4xf32, #tpu.memory_space<vmem>>) attributes {dimension_semantics = [#tpu.dimension_semantics<parallel>, #tpu.dimension_semantics<arbitrary>], iteration_bounds = array<i64: 1, 1>, scalar_prefetch = 0 : i64, scratch_operands = 0 : i64, tpu.core_type = #tpu.core_type<tc>, window_params = [{transform_indices = @transform_0, window_bounds = array<i64: 4, 256>}, {transform_indices = @transform_1, window_bounds = array<i64: 1, 4, 4>}]} {
    %c0_i32 = arith.constant 0 : i32
    %0 = arith.cmpi eq, %arg1, %c0_i32 : i32
    %1 = arith.extui %0 : i1 to i32
    %c0_i32_0 = arith.constant 0 : i32
    %2 = arith.cmpi ne, %1, %c0_i32_0 : i32
    scf.if %2 {
      %cst_8 = arith.constant 0.000000e+00 : f32
      %11 = vector.broadcast %cst_8 : f32 to vector<4x4xf32>
      %c0_9 = arith.constant 0 : index
      %c0_10 = arith.constant 0 : index
      %c0_11 = arith.constant 0 : index
      %12 = vector.load %arg3[%c0_9, %c0_10, %c0_11] : memref<1x4x4xf32, #tpu.memory_space<vmem>>, vector<1x4x4xf32>
      %13 = vector.shape_cast %12 : vector<1x4x4xf32> to vector<4x4xf32>
      %14 = vector.shape_cast %11 : vector<4x4xf32> to vector<1x4x4xf32>
      tpu.vector_store %arg3[%c0_9, %c0_10, %c0_11], %14 {strides = array<i32>} : memref<1x4x4xf32, #tpu.memory_space<vmem>>, vector<1x4x4xf32>,
    } else {
    }
    %c0 = arith.constant 0 : index
    %c0_1 = arith.constant 0 : index
    %3 = vector.load %arg2[%c0, %c0_1] : memref<4x256xf32, #tpu.memory_space<vmem>>, vector<4x256xf32>
    %c0_2 = arith.constant 0 : index
    %c0_3 = arith.constant 0 : index
    %c0_4 = arith.constant 0 : index
    %4 = vector.load %arg3[%c0_2, %c0_3, %c0_4] : memref<1x4x4xf32, #tpu.memory_space<vmem>>, vector<1x4x4xf32>
    %5 = vector.shape_cast %4 : vector<1x4x4xf32> to vector<4x4xf32>
    %cst = arith.constant dense<0.000000e+00> : vector<4x4xf32>
    %6 = tpu.matmul %3, %3, %cst {dimension_numbers = #tpu.dot_dimension_numbers<[1], [1], [0], [0], [0, 0, 1, 0], [], []>} : vector<4x256xf32>, vector<4x256xf32>, vector<4x4xf32> -> vector<4x4xf32>
    %7 = arith.addf %5, %6 : vector<4x4xf32>
    %c0_5 = arith.constant 0 : index
    %c0_6 = arith.constant 0 : index
    %c0_7 = arith.constant 0 : index
    %8 = vector.load %arg3[%c0_5, %c0_6, %c0_7] : memref<1x4x4xf32, #tpu.memory_space<vmem>>, vector<1x4x4xf32>
    %9 = vector.shape_cast %8 : vector<1x4x4xf32> to vector<4x4xf32>
    %10 = vector.shape_cast %7 : vector<4x4xf32> to vector<1x4x4xf32>
    tpu.vector_store %arg3[%c0_5, %c0_6, %c0_7], %10 {strides = array<i32>} : memref<1x4x4xf32, #tpu.memory_space<vmem>>, vector<1x4x4xf32>,
    return
  }
  func.func @transform_0(%arg0: i32, %arg1: i32) -> (i32, i32) {
    %c1_i32 = arith.constant 1 : i32
    %0 = arith.muli %arg0, %c1_i32 : i32
    %1 = arith.addi %0, %arg1 : i32
    %c0_i32 = arith.constant 0 : i32
    %c0_i32_0 = arith.constant 0 : i32
    return %c0_i32, %1 : i32, i32
  }
  func.func @transform_1(%arg0: i32, %arg1: i32) -> (i32, i32, i32) {
    %c0_i32 = arith.constant 0 : i32
    %c0_i32_0 = arith.constant 0 : i32
    %c0_i32_1 = arith.constant 0 : i32
    return %arg0, %c0_i32, %c0_i32_0 : i32, i32, i32
  }
}

module attributes {stable_mosaic.version = 11 : i64} {
  func.func @_proj_area_kernel(%arg0: i32, %arg1: memref<3x512xf32, #tpu.memory_space<vmem>>, %arg2: memref<4x3xf32, #tpu.memory_space<vmem>>, %arg3: memref<4x1xf32, #tpu.memory_space<vmem>>, %arg4: memref<4x128xf32, #tpu.memory_space<vmem>>) attributes {dimension_semantics = [#tpu.dimension_semantics<arbitrary>], iteration_bounds = array<i64: 1>, scalar_prefetch = 0 : i64, scratch_operands = 1 : i64, tpu.core_type = #tpu.core_type<tc>, window_params = [{transform_indices = @transform_0, window_bounds = array<i64: 3, 512>}, {pipeline_mode = #tpu.pipeline_mode<synchronous>, transform_indices = @transform_1, window_bounds = array<i64: 4, 3>}, {pipeline_mode = #tpu.pipeline_mode<synchronous>, transform_indices = @transform_2, window_bounds = array<i64: 4, 1>}]} {
    %c0_i32 = arith.constant 0 : i32
    %0 = arith.cmpi eq, %arg0, %c0_i32 : i32
    %1 = arith.extui %0 : i1 to i32
    %c0_i32_0 = arith.constant 0 : i32
    %2 = arith.cmpi ne, %1, %c0_i32_0 : i32
    scf.if %2 {
      %cst_23 = arith.constant 0.000000e+00 : f32
      %45 = vector.broadcast %cst_23 : f32 to vector<4x128xf32>
      %c0_24 = arith.constant 0 : index
      %c0_25 = arith.constant 0 : index
      %46 = vector.load %arg4[%c0_24, %c0_25] : memref<4x128xf32, #tpu.memory_space<vmem>>, vector<4x128xf32>
      tpu.vector_store %arg4[%c0_24, %c0_25], %45 {strides = array<i32>} : memref<4x128xf32, #tpu.memory_space<vmem>>, vector<4x128xf32>,
    } else {
    }
    %c0 = arith.constant 0 : index
    %c0_1 = arith.constant 0 : index
    %3 = vector.load %arg1[%c0, %c0_1] : memref<3x512xf32, #tpu.memory_space<vmem>>, vector<3x512xf32>
    %c0_2 = arith.constant 0 : index
    %c0_3 = arith.constant 0 : index
    %4 = vector.load %arg2[%c0_2, %c0_3] : memref<4x3xf32, #tpu.memory_space<vmem>>, vector<4x3xf32>
    %5 = vector.extract_strided_slice %4 {offsets = [0, 0], sizes = [4, 1], strides = [1, 1]} : vector<4x3xf32> to vector<4x1xf32>
    %6 = vector.extract_strided_slice %3 {offsets = [0, 0], sizes = [1, 512], strides = [1, 1]} : vector<3x512xf32> to vector<1x512xf32>
    %7 = vector.broadcast %5 : vector<4x1xf32> to vector<4x512xf32>
    %8 = vector.broadcast %6 : vector<1x512xf32> to vector<4x512xf32>
    %9 = arith.mulf %7, %8 : vector<4x512xf32>
    %10 = vector.extract_strided_slice %4 {offsets = [0, 1], sizes = [4, 1], strides = [1, 1]} : vector<4x3xf32> to vector<4x1xf32>
    %11 = vector.extract_strided_slice %3 {offsets = [1, 0], sizes = [1, 512], strides = [1, 1]} : vector<3x512xf32> to vector<1x512xf32>
    %12 = vector.broadcast %10 : vector<4x1xf32> to vector<4x512xf32>
    %13 = vector.broadcast %11 : vector<1x512xf32> to vector<4x512xf32>
    %14 = arith.mulf %12, %13 : vector<4x512xf32>
    %15 = arith.addf %9, %14 : vector<4x512xf32>
    %16 = vector.extract_strided_slice %4 {offsets = [0, 2], sizes = [4, 1], strides = [1, 1]} : vector<4x3xf32> to vector<4x1xf32>
    %17 = vector.extract_strided_slice %3 {offsets = [2, 0], sizes = [1, 512], strides = [1, 1]} : vector<3x512xf32> to vector<1x512xf32>
    %18 = vector.broadcast %16 : vector<4x1xf32> to vector<4x512xf32>
    %19 = vector.broadcast %17 : vector<1x512xf32> to vector<4x512xf32>
    %20 = arith.mulf %18, %19 : vector<4x512xf32>
    %21 = arith.addf %15, %20 : vector<4x512xf32>
    %cst = arith.constant 0.000000e+00 : f32
    %22 = vector.broadcast %cst : f32 to vector<4x512xf32>
    %23 = arith.subf %22, %21 : vector<4x512xf32>
    %cst_4 = arith.constant 0.000000e+00 : f32
    %24 = vector.broadcast %cst_4 : f32 to vector<4x512xf32>
    %25 = arith.maximumf %23, %24 : vector<4x512xf32>
    %c0_5 = arith.constant 0 : index
    %c0_6 = arith.constant 0 : index
    %26 = vector.load %arg4[%c0_5, %c0_6] : memref<4x128xf32, #tpu.memory_space<vmem>>, vector<4x128xf32>
    %27 = vector.extract_strided_slice %25 {offsets = [0, 0], sizes = [4, 128], strides = [1, 1]} : vector<4x512xf32> to vector<4x128xf32>
    %28 = arith.addf %26, %27 : vector<4x128xf32>
    %c0_7 = arith.constant 0 : index
    %c0_8 = arith.constant 0 : index
    %29 = vector.load %arg4[%c0_7, %c0_8] : memref<4x128xf32, #tpu.memory_space<vmem>>, vector<4x128xf32>
    tpu.vector_store %arg4[%c0_7, %c0_8], %28 {strides = array<i32>} : memref<4x128xf32, #tpu.memory_space<vmem>>, vector<4x128xf32>,
    %c0_9 = arith.constant 0 : index
    %c0_10 = arith.constant 0 : index
    %30 = vector.load %arg4[%c0_9, %c0_10] : memref<4x128xf32, #tpu.memory_space<vmem>>, vector<4x128xf32>
    %31 = vector.extract_strided_slice %25 {offsets = [0, 128], sizes = [4, 128], strides = [1, 1]} : vector<4x512xf32> to vector<4x128xf32>
    %32 = arith.addf %30, %31 : vector<4x128xf32>
    %c0_11 = arith.constant 0 : index
    %c0_12 = arith.constant 0 : index
    %33 = vector.load %arg4[%c0_11, %c0_12] : memref<4x128xf32, #tpu.memory_space<vmem>>, vector<4x128xf32>
    tpu.vector_store %arg4[%c0_11, %c0_12], %32 {strides = array<i32>} : memref<4x128xf32, #tpu.memory_space<vmem>>, vector<4x128xf32>,
    %c0_13 = arith.constant 0 : index
    %c0_14 = arith.constant 0 : index
    %34 = vector.load %arg4[%c0_13, %c0_14] : memref<4x128xf32, #tpu.memory_space<vmem>>, vector<4x128xf32>
    %35 = vector.extract_strided_slice %25 {offsets = [0, 256], sizes = [4, 128], strides = [1, 1]} : vector<4x512xf32> to vector<4x128xf32>
    %36 = arith.addf %34, %35 : vector<4x128xf32>
    %c0_15 = arith.constant 0 : index
    %c0_16 = arith.constant 0 : index
    %37 = vector.load %arg4[%c0_15, %c0_16] : memref<4x128xf32, #tpu.memory_space<vmem>>, vector<4x128xf32>
    tpu.vector_store %arg4[%c0_15, %c0_16], %36 {strides = array<i32>} : memref<4x128xf32, #tpu.memory_space<vmem>>, vector<4x128xf32>,
    %c0_17 = arith.constant 0 : index
    %c0_18 = arith.constant 0 : index
    %38 = vector.load %arg4[%c0_17, %c0_18] : memref<4x128xf32, #tpu.memory_space<vmem>>, vector<4x128xf32>
    %39 = vector.extract_strided_slice %25 {offsets = [0, 384], sizes = [4, 128], strides = [1, 1]} : vector<4x512xf32> to vector<4x128xf32>
    %40 = arith.addf %38, %39 : vector<4x128xf32>
    %c0_19 = arith.constant 0 : index
    %c0_20 = arith.constant 0 : index
    %41 = vector.load %arg4[%c0_19, %c0_20] : memref<4x128xf32, #tpu.memory_space<vmem>>, vector<4x128xf32>
    tpu.vector_store %arg4[%c0_19, %c0_20], %40 {strides = array<i32>} : memref<4x128xf32, #tpu.memory_space<vmem>>, vector<4x128xf32>,
    %c0_i32_21 = arith.constant 0 : i32
    %42 = arith.cmpi eq, %arg0, %c0_i32_21 : i32
    %43 = arith.extui %42 : i1 to i32
    %c0_i32_22 = arith.constant 0 : i32
    %44 = arith.cmpi ne, %43, %c0_i32_22 : i32
    scf.if %44 {
      %c0_23 = arith.constant 0 : index
      %c0_24 = arith.constant 0 : index
      %45 = vector.load %arg4[%c0_23, %c0_24] : memref<4x128xf32, #tpu.memory_space<vmem>>, vector<4x128xf32>
      %cst_25 = arith.constant dense<0.000000e+00> : vector<4xf32>
      %46 = vector.multi_reduction <add>, %45, %cst_25 [1] : vector<4x128xf32> to vector<4xf32>
      %47 = vector.shape_cast %46 : vector<4xf32> to vector<4x1xf32>
      %c0_26 = arith.constant 0 : index
      %c0_27 = arith.constant 0 : index
      %48 = vector.load %arg3[%c0_26, %c0_27] : memref<4x1xf32, #tpu.memory_space<vmem>>, vector<4x1xf32>
      tpu.vector_store %arg3[%c0_26, %c0_27], %47 {strides = array<i32>} : memref<4x1xf32, #tpu.memory_space<vmem>>, vector<4x1xf32>,
    } else {
    }
    return
  }
  func.func @transform_0(%arg0: i32) -> (i32, i32) {
    %c0_i32 = arith.constant 0 : i32
    %c0_i32_0 = arith.constant 0 : i32
    return %c0_i32, %arg0 : i32, i32
  }
  func.func @transform_1(%arg0: i32) -> (i32, i32) {
    %c0_i32 = arith.constant 0 : i32
    %c0_i32_0 = arith.constant 0 : i32
    %c0_i32_1 = arith.constant 0 : i32
    return %c0_i32, %c0_i32_0 : i32, i32
  }
  func.func @transform_2(%arg0: i32) -> (i32, i32) {
    %c0_i32 = arith.constant 0 : i32
    %c0_i32_0 = arith.constant 0 : i32
    %c0_i32_1 = arith.constant 0 : i32
    return %c0_i32, %c0_i32_0 : i32, i32
  }
}

</mosaic_0001>

<bundles_post_ra>
// kernel: contrastive_loss.3
= control target key start
LH: loop header
LB: loop body
LE: loop exit
PB: predicated region body
PF: predicated region fallthrough
CT: control target
= control target key end

     0   :  { %v204_v0 = vmov 0   ;;  %v205_v2 = vmov 2   ;;  %v206_v3 = vmov 1   ;;  %v207_v4 = vmov 0.0   ;;  %s243_s1 = inlined_call_operand.vmem [shape: f32[4,3], index: 1, kind: input, shape index: {}]   ;;  %s244_s0 = inlined_call_operand.vmem [shape: f32[3,512], index: 0, kind: input, shape index: {}]   ;;  %s245_s2 = inlined_call_operand.vmem [shape: f32[4,1], index: 2, kind: output, shape index: {}]  }
   0x1   :  { %200 = vset.pattern.permute.xlu0 %v204_v0  ;;  %v18_v1 = vld [vmem:[%s243_s1] sm:$0xf]  ;;  %202 = vset.pattern.permute.xlu1 %v205_v2  ;;  %15 = vst [vmem:[#allocation2] sm:$0xf] %v207_v4  ;;  %v26_v5 = vlaneseq  ;;  %v17_v34 = vld [vmem:[%s244_s0 + $0x8] sm:$0x77] }
   0x2   :  { %21 = vperm.xlu0 %200, %v18_v1   ;;  %115 = vperm.xlu1 %202, %v18_v1   ;;  %v16_v10 = vld [vmem:[%s244_s0] sm:$0x77]  ;;  %vm186_vm0 = vcmask 1043456   ;;  %vm190_vm1 = vcmask 3072  }
   0x3   :  { %v27_v6 = vshrl.u32 %v26_v5, 7 }
   0x5   :  { %v28_v7 = vsub.s32 0, %v27_v6  ;;  %v72_v8 = vsub.s32 1, %v27_v6  ;;  %v226_v9 = vsub.s32 2, %v27_v6  ;;  %v76_v11 = vsub.s32 5, %v27_v6 }
   0x6   :  { %201 = vset.pattern.permute.xlu0 %v206_v3  ;;  %v32_v12 = vsub.s32 4, %v27_v6  ;;  %v124_v18 = vsub.s32 6, %v27_v6 }
   0x7   :  { %67 = vperm.xlu0 %201, %v18_v1   ;;  %v29_v13 = vrot.slane %v16_v10, %v28_v7  ;;  %v73_v14 = vrot.slane %v16_v10, %v72_v8  ;;  %v121_v15 = vrot.slane %v16_v10, %v226_v9  ;;  %v77_v17 = vrot.slane %v16_v10, %v76_v11 }
   0x8   :  { %v33_v19 = vrot.slane %v16_v10, %v32_v12  ;;  %v125_v25 = vrot.slane %v16_v10, %v124_v18  ;;  %v81_v36 = vrot.slane %v17_v34, %v72_v8  ;;  %v37_v38 = vrot.slane %v17_v34, %v28_v7  ;;  %v170_v42 = vld [vmem:[#allocation2] sm:$0xf] }
   0x9   :  { %v49_v20 = vrot.slane %v29_v13, %v28_v7  ;;  %v93_v21 = vrot.slane %v73_v14, %v72_v8  ;;  %v141_v22 = vrot.slane %v121_v15, %v226_v9  ;;  %v97_v24 = vrot.slane %v77_v17, %v72_v8 }
   0xa   :  { %v53_v27 = vrot.slane %v33_v19, %v28_v7  ;;  %v145_v33 = vrot.slane %v125_v25, %v226_v9  ;;  %v101_v43 = vrot.slane %v81_v36, %v72_v8  ;;  %v129_v44 = vrot.slane %v17_v34, %v226_v9 }
   0xb   :  { %203 = vset.pattern.permute.xlu0 %v205_v2  ;;  %v57_v46 = vrot.slane %v37_v38, %v28_v7  ;;  %v85_v52 = vrot.slane %v17_v34, %v76_v11  ;;  %v41_v54 = vrot.slane %v17_v34, %v32_v12  ;;  %v133_v58 = vrot.slane %v17_v34, %v124_v18 }
   0xc   :  { %v149_v50 = vrot.slane %v129_v44, %v226_v9 }
   0xd   :  { %v105_v57 = vrot.slane %v85_v52, %v72_v8  ;;  %v61_v61 = vrot.slane %v41_v54, %v28_v7  ;;  %v153_v1 = vrot.slane %v133_v58, %v226_v9 }
  0x81   :  { %v22_v16 = vpop.permute.xlu0 %21  ;;  %v116_v23 = vpop.permute.xlu1 %115 }
  0x82   :  { %v62_v28 = vmul.f32 %v49_v20, %v22_v16  ;;  %v154_v30 = vmul.f32 %v141_v22, %v116_v23  ;;  %v63_v35 = vmul.f32 %v53_v27, %v22_v16  ;;  %v155_v40 = vmul.f32 %v145_v33, %v116_v23 }
  0x83   :  { %v64_v51 = vmul.f32 %v57_v46, %v22_v16  ;;  %v156_v56 = vmul.f32 %v149_v50, %v116_v23  ;;  %v65_v2 = vmul.f32 %v61_v61, %v22_v16  ;;  %v157_v5 = vmul.f32 %v153_v1, %v116_v23 }
  0x86   :  { %v68_v26 = vpop.permute.xlu0 %67 }
  0x87   :  { %v106_v29 = vmul.f32 %v93_v21, %v68_v26  ;;  %v107_v31 = vmul.f32 %v97_v24, %v68_v26  ;;  %v108_v49 = vmul.f32 %v101_v43, %v68_v26  ;;  %v109_v0 = vmul.f32 %v105_v57, %v68_v26 }
  0x89   :  { %v110_v32 = vadd.f32 %v106_v29, %v62_v28  ;;  %v111_v39 = vadd.f32 %v107_v31, %v63_v35  ;;  %v112_v55 = vadd.f32 %v108_v49, %v64_v51  ;;  %v113_v4 = vadd.f32 %v109_v0, %v65_v2 }
  0x8b   :  { %v158_v37 = vadd.f32 %v154_v30, %v110_v32  ;;  %v159_v47 = vadd.f32 %v155_v40, %v111_v39  ;;  %v160_v62 = vadd.f32 %v156_v56, %v112_v55  ;;  %v161_v11 = vadd.f32 %v157_v5, %v113_v4 }
  0x8d   :  { %v162_v41 = vsub.f32 0.0, %v158_v37  ;;  %v163_v53 = vsub.f32 0.0, %v159_v47  ;;  %v164_v3 = vsub.f32 0.0, %v160_v62  ;;  %v165_v8 = vsub.f32 0.0, %v161_v11 }
  0x8f   :  { %v166_v45 = vmax.f32 %v162_v41, 0.0  ;;  %v167_v59 = vmax.f32 %v163_v53, 0.0  ;;  %v168_v6 = vmax.f32 %v164_v3, 0.0  ;;  %v169_v13 = vmax.f32 %v165_v8, 0.0 }
  0x91   :  { %v171_v48 = vadd.f32 %v170_v42, %v166_v45 }
  0x93   :  { %172 = vst [vmem:[#allocation2] sm:$0xf] %v171_v48 }
  0x9a   :  { %v173_v60 = vld [vmem:[#allocation2] sm:$0xf] }
  0x9b   :  { %v174_v63 = vadd.f32 %v173_v60, %v167_v59 }
  0x9d   :  { %175 = vst [vmem:[#allocation2] sm:$0xf] %v174_v63 }
  0xa4   :  { %v176_v10 = vld [vmem:[#allocation2] sm:$0xf] }
  0xa5   :  { %v177_v12 = vadd.f32 %v176_v10, %v168_v6 }
  0xa7   :  { %178 = vst [vmem:[#allocation2] sm:$0xf] %v177_v12 }
  0xae   :  { %v179_v14 = vld [vmem:[#allocation2] sm:$0xf] }
  0xaf   :  { %v180_v15 = vadd.f32 %v179_v14, %v169_v13 }
  0xb1   :  { %181 = vst [vmem:[#allocation2] sm:$0xf] %v180_v15 }
  0xb8   :  { %v185_v7 = vld [vmem:[#allocation2] sm:$0xf] }
  0xb9   :  { %v187_v17 = vsel %vm186_vm0, %v185_v7, 0.0 }
  0xba   :  { %188 = vadd.xlane.f32.xlu1 %v187_v17 }
 0x147   :  { %v189_v9 = vpop.xlane.xlu1 %188 }
 0x148   :  { %191 = vst.msk [vmem:[%s245_s2] sm:$0xf] %vm190_vm1, %v189_v9 }

// kernel: contrastive_loss.2
= control target key start
LH: loop header
LB: loop body
LE: loop exit
PB: predicated region body
PF: predicated region fallthrough
CT: control target
= control target key end

     0   :  { %vm34_vm0 = vcmask 27648   ;;  %v126_v1 = vmov 0.0   ;;  %s149_s0 = inlined_call_operand.vmem [shape: f32[4,256], index: 0, kind: input, shape index: {}]   ;;  %s150_s1 = inlined_call_operand.vmem [shape: f32[1,4,4], index: 1, kind: output, shape index: {}]  }
   0x1   :  { %v36_v0 = vld [vmem:[%s149_s0] sm:$0xff]  ;;  %35 = vst.msk [vmem:[%s150_s1] sm:$0xf] %vm34_vm0, %v126_v1 }
   0x2   :  { %v39_v2 = vcombine.high %v36_v0, %v36_v0 }
   0x4   :  { %41 = vmatprep.subr.mxu0 %v39_v2  ;;  %105 = vmatprep.mubr.f32.mxu0 %v39_v2 }
   0x5   :  { %42 = vmatpush1.xpose.msra.mxu0 %v36_v0 }
   0x8   :  { %106 = vmatmul.mubr.f32.vlgmr.msra.gmra.mrb[0].mxu0 %v36_v0  ;;  %v37_v3 = vld [vmem:[%s150_s1] sm:$0xf] }
  0xdb   :  { %v107_v4 = vpop.f32.mrb[0].mxu0 }
  0xdc   :  { %v111_v5 = vadd.f32 %v107_v4, %v37_v3  ;;  %v109_v6 = vpop.f32.mrb[1].mxu0 }
  0xde   :  { %113 = vst.msk [vmem:[%s150_s1] sm:$0xf] %vm34_vm0, %v111_v5 }

</bundles_post_ra>
